<compile_context>
chip_gen: v7x
topology: tpu7x:2x2x1
jax: 0.10.0
libtpu: 0.0.40
codegen_flags: <defaults>
</compile_context>

<pallas_src>
import functools

import jax
import jax.numpy as jnp
from jax import lax
from jax.experimental import pallas as pl
from jax.experimental.pallas import tpu as pltpu


_BLOCK_BUDGET_BYTES = 8 << 20   # per input block (Pallas double-buffers it)
_VMEM_LIMIT_BYTES = 40 << 20    # > v5e/v6e scoped defaults, < v7x 64 MiB physical


def _round_up(a, b):
    return (a + b - 1) // b * b


def _gap_rows_kernel(x_ref, o_ref, *, inv_hw):
    # x_ref: (row_blk, HW)  one contiguous row slab
    # o_ref: (row_blk, 1)   per-row mean
    s = jnp.sum(x_ref[...].astype(jnp.float32), axis=-1, keepdims=True)
    o_ref[...] = (s * inv_hw).astype(o_ref.dtype)


def _gap_chunked_kernel(x_ref, o_ref, acc_ref, *, inv_hw, hw, hw_blk):
    # x_ref  : (row_blk, hw_blk)  one HW chunk of a row block
    # o_ref  : (row_blk, 1)       per-row mean (written on the last chunk)
    # acc_ref: (row_blk, 128) f32 running partial sums (VPU lane-slice adds)
    k = pl.program_id(1)
    n_hw = pl.num_programs(1)
    n_lanes = hw_blk // 128
    tail = hw % hw_blk                      # 0 if HW divides evenly
    unroll = min(8, n_lanes)

    @pl.when(k == 0)
    def _():
        acc_ref[...] = jnp.zeros_like(acc_ref)

    def _add_full(j, carry):
        off = pl.multiple_of(j * 128, 128)
        acc_ref[...] += x_ref[:, pl.ds(off, 128)].astype(jnp.float32)
        return carry

    if tail == 0:
        lax.fori_loop(0, n_lanes, _add_full, 0, unroll=unroll)
    else:
        @pl.when(k < n_hw - 1)
        def _():
            lax.fori_loop(0, n_lanes, _add_full, 0, unroll=unroll)

        @pl.when(k == n_hw - 1)
        def _():
            def _add_masked(j, carry):
                off = pl.multiple_of(j * 128, 128)
                xs = x_ref[:, pl.ds(off, 128)].astype(jnp.float32)
                lane = lax.broadcasted_iota(jnp.int32, xs.shape, 1) + off
                acc_ref[...] += jnp.where(lane < tail, xs, 0.0)
                return carry
            lax.fori_loop(0, n_lanes, _add_masked, 0, unroll=unroll)

    @pl.when(k == n_hw - 1)
    def _():
        s = jnp.sum(acc_ref[...], axis=-1, keepdims=True)   # single lane reduce
        o_ref[...] = (s * inv_hw).astype(o_ref.dtype)


def fast_avg_pool2d(x, flatten=False, *, block_budget_bytes=_BLOCK_BUDGET_BYTES):
    """x: (N, C, H, W) -> (N, C, 1, 1), or (N, C) when flatten=True."""
    N, C, H, W = x.shape
    R, HW = N * C, H * W
    dt = x.dtype
    itemsize = dt.itemsize
    inv_hw = 1.0 / float(HW)
    x2 = x.reshape(R, HW)                   # free view of contiguous NCHW

    bytes_per_row = HW * itemsize
    cost = pl.CostEstimate(flops=R * HW, transcendentals=0,
                           bytes_accessed=R * HW * itemsize + R * itemsize)

    if 8 * bytes_per_row <= block_budget_bytes:
        # ---- Common case: whole-HW row slabs, grid over row blocks only. ----
        if R * bytes_per_row <= block_budget_bytes:
            row_blk = R                     # everything in one block
        else:
            max_row_blk = max(8, (block_budget_bytes // bytes_per_row) // 8 * 8)
            n_row = pl.cdiv(R, max_row_blk)
            row_blk = _round_up(pl.cdiv(R, n_row), 8)    # balanced, 8-multiple
        grid = (pl.cdiv(R, row_blk),)

        out2 = pl.pallas_call(
            functools.partial(_gap_rows_kernel, inv_hw=inv_hw),
            out_shape=jax.ShapeDtypeStruct((R, 1), dt),
            grid_spec=pltpu.PrefetchScalarGridSpec(
                num_scalar_prefetch=0,
                grid=grid,
                in_specs=[pl.BlockSpec((row_blk, HW), lambda r: (r, 0))],
                out_specs=pl.BlockSpec((row_blk, 1), lambda r: (r, 0)),
            ),
            compiler_params=pltpu.CompilerParams(
                dimension_semantics=("parallel",),
                vmem_limit_bytes=_VMEM_LIMIT_BYTES),
            cost_estimate=cost,
        )(x2)
    else:
        # ---- Huge HW: chunk the reduction axis, (row_blk, 128) f32 acc. ----
        row_blk = R if R < 8 else 8
        hw_blk = (block_budget_bytes // (row_blk * itemsize)) // 128 * 128
        hw_blk = max(128, min(hw_blk, _round_up(HW, 128)))
        grid = (pl.cdiv(R, row_blk), pl.cdiv(HW, hw_blk))

        out2 = pl.pallas_call(
            functools.partial(_gap_chunked_kernel, inv_hw=inv_hw, hw=HW,
                              hw_blk=hw_blk),
            out_shape=jax.ShapeDtypeStruct((R, 1), dt),
            grid_spec=pltpu.PrefetchScalarGridSpec(
                num_scalar_prefetch=0,
                grid=grid,
                in_specs=[pl.BlockSpec((row_blk, hw_blk), lambda r, k: (r, k))],
                out_specs=pl.BlockSpec((row_blk, 1), lambda r, k: (r, 0)),
                scratch_shapes=[pltpu.VMEM((row_blk, 128), jnp.float32)],
            ),
            compiler_params=pltpu.CompilerParams(
                dimension_semantics=("parallel", "arbitrary"),
                vmem_limit_bytes=_VMEM_LIMIT_BYTES),
            cost_estimate=cost,
        )(x2)

    if flatten:
        return out2.reshape(N, C)
    return out2.reshape(N, C, 1, 1)


def _reference(x, flatten=False):
    N, C = x.shape[0], x.shape[1]
    m = x.reshape(N, C, -1).mean(-1)
    return m if flatten else m.reshape(N, C, 1, 1)


if __name__ == "__main__":
    key = jax.random.PRNGKey(0)
    x = jax.random.normal(key, (2, 4, 16, 16), dtype=jnp.float32)

    # Default module path: flatten=False -> (N, C, 1, 1)
    out = jax.block_until_ready(fast_avg_pool2d(x))
    ref = _reference(x)
    assert out.shape == (2, 4, 1, 1), out.shape
    assert out.dtype == x.dtype
    assert jnp.allclose(out, ref, atol=1e-6, rtol=1e-6), "mismatch (flatten=False)"

    # flatten=True path -> (N, C)
    out_f = jax.block_until_ready(fast_avg_pool2d(x, flatten=True))
    ref_f = _reference(x, flatten=True)
    assert out_f.shape == (2, 4), out_f.shape
    assert jnp.allclose(out_f, ref_f, atol=1e-6, rtol=1e-6), "mismatch (flatten=True)"

    # Ragged row count (N*C = 15, not a multiple of 8).
    x_r = jax.random.normal(jax.random.PRNGKey(1), (3, 5, 8, 8), dtype=jnp.float32)
    out_r = jax.block_until_ready(fast_avg_pool2d(x_r))
    assert jnp.allclose(out_r, _reference(x_r), atol=1e-6, rtol=1e-6), "mismatch (ragged rows)"

    # HW-chunked reduction path with a masked tail chunk (forced small budget).
    x_c = jax.random.normal(jax.random.PRNGKey(2), (2, 4, 32, 40), dtype=jnp.float32)
    out_c = jax.block_until_ready(fast_avg_pool2d(x_c, block_budget_bytes=16 * 1024))
    assert jnp.allclose(out_c, _reference(x_c), atol=1e-6, rtol=1e-6), "mismatch (chunked HW)"

    print("KERNEL_OK")
</pallas_src>

<mosaic_0001>
module attributes {stable_mosaic.version = 11 : i64} {
  func.func @_gap_rows_kernel(%arg0: i32, %arg1: memref<8x256xf32, #tpu.memory_space<vmem>>, %arg2: memref<8x1xf32, #tpu.memory_space<vmem>>) attributes {dimension_semantics = [#tpu.dimension_semantics<parallel>], iteration_bounds = array<i64: 1>, scalar_prefetch = 0 : i64, scratch_operands = 0 : i64, tpu.core_type = #tpu.core_type<tc>, window_params = [{transform_indices = @transform_0, window_bounds = array<i64: 8, 256>}, {transform_indices = @transform_1, window_bounds = array<i64: 8, 1>}]} {
    %c0 = arith.constant 0 : index
    %c0_0 = arith.constant 0 : index
    %0 = vector.load %arg1[%c0, %c0_0] : memref<8x256xf32, #tpu.memory_space<vmem>>, vector<8x256xf32>
    %cst = arith.constant dense<0.000000e+00> : vector<8xf32>
    %1 = vector.multi_reduction <add>, %0, %cst [1] : vector<8x256xf32> to vector<8xf32>
    %2 = vector.shape_cast %1 : vector<8xf32> to vector<8x1xf32>
    %cst_1 = arith.constant 3.906250e-03 : f32
    %3 = vector.broadcast %cst_1 : f32 to vector<8x1xf32>
    %4 = arith.mulf %2, %3 : vector<8x1xf32>
    %c0_2 = arith.constant 0 : index
    %c0_3 = arith.constant 0 : index
    %5 = vector.load %arg2[%c0_2, %c0_3] : memref<8x1xf32, #tpu.memory_space<vmem>>, vector<8x1xf32>
    tpu.vector_store %arg2[%c0_2, %c0_3], %4 {strides = array<i32>} : memref<8x1xf32, #tpu.memory_space<vmem>>, vector<8x1xf32>,
    return
  }
  func.func @transform_0(%arg0: i32) -> (i32, i32) {
    %c0_i32 = arith.constant 0 : i32
    %c0_i32_0 = arith.constant 0 : i32
    return %arg0, %c0_i32 : i32, i32
  }
  func.func @transform_1(%arg0: i32) -> (i32, i32) {
    %c0_i32 = arith.constant 0 : i32
    %c0_i32_0 = arith.constant 0 : i32
    return %arg0, %c0_i32 : i32, i32
  }
}

</mosaic_0001>

<bundles_post_ra>
// kernel: tpu_custom_call.1
= control target key start
LH: loop header
LB: loop body
LE: loop exit
PB: predicated region body
PF: predicated region fallthrough
CT: control target
= control target key end

     0   :  { %6 = vsyncpa [#allocation3], 0  ;;  %s58_s6 = smov [#allocation2]   ;;  %s84_s0 = inlined_call_operand.hbm [shape: f32[8,256], index: 0, kind: input, shape index: {}]   ;;  %s85_s1 = inlined_call_operand.vmem [shape: f32[8,1], index: 1, kind: output, shape index: {}]  }
   0x1   :  { %s13_s7 = sshll.u32 %s58_s6, 4  ;;  %s34_s10 = scalar_lea.hbm %s84_s0, 256  ;;  %s14_s7 = int_to_ptr.vmem [resolvable:$true] %s13_s7 }
   0x2   :  { %p35_p0 = scmp.ne.s32.totalorder %s84_s0, %s34_s10  ;;  %p38_p1 = scmp.lt.u32.totalorder %s34_s10, %s84_s0 }
   0x4   :  { %p40_p2 = pnand %p38_p1, %p35_p0 }
   0x6   :  { %43 = shalt.err (!%p40_p2)
}
   0x7   :  { %s44_s15 = scalar_lea.vmem %s14_s7, 256  ;;  %p49_p4 = scmp.lt.s32.totalorder %s14_s7, %s14_s7 }
   0x8   :  { %p45_p3 = scmp.ne.s32.totalorder %s14_s7, %s44_s15  ;;  %p50_p5 = scmp.lt.s32.totalorder %s44_s15, %s44_s15 }
   0xa   :  { %p51_p6 = por %p50_p5, %p49_p4 }
   0xc   :  { %p52_p7 = pnand %p51_p6, %p45_p3 }
   0xe   :  { %55 = shalt.err (!%p52_p7)
}
   0xf   :  { %16 = dma.hbm_to_vmem [thread:$0]  %s84_s0, 256, %s14_s7, [#allocation3]  }
  0x10   :  { %56 = dma.done.wait [#allocation3], 256  }
  0x11   :  { %57 = vsyncadd [#allocation3], 4294967040  ;;  %v20_v0 = vld [vmem:[#allocation2] sm:$0xff]  ;;  %v21_v1 = vld [vmem:[#allocation2 + $0x8] sm:$0xff]  ;;  %vm26_vm0 = vcmask 7168  }
  0x12   :  { %v22_v2 = vadd.f32 %v21_v1, %v20_v0 }
  0x14   :  { %23 = vadd.xlane.f32.xlu0 %v22_v2 }
  0xa1   :  { %v24_v3 = vpop.xlane.xlu0 %23 }
  0xa2   :  { %v25_v4 = vmul.f32 0.00390625, %v24_v3 }
  0xa4   :  { %27 = vst.msk [vmem:[%s85_s1] sm:$0xff] %vm26_vm0, %v25_v4 }
  0xa5   :  { %32 = vsyncpa [#allocation3], 1 }

</bundles_post_ra>
